<compile_context>
chip_gen: v6e
topology: v6e:2x2x1
jax: 0.10.0
libtpu: 0.0.40
codegen_flags: <defaults>
</compile_context>

<pallas_src>
import functools

import jax
import jax.numpy as jnp
from jax.experimental import pallas as pl
from jax.experimental.pallas import tpu as pltpu


def _dice_sums_kernel(score_ref, target_ref, out_ref, *, fuse_softmax,
                      need_mask, rows_tile, hw):
    """Accumulates per-class [intersect, z_sum, y_sum] partial lane sums.

    score_ref : (C, rows_tile, 128) scores for this pixel tile (native dtype)
    target_ref: (1, rows_tile, 128) integer labels for this pixel tile
    out_ref   : (3*C, 128) f32 running sums, resident across the reduction axis
    """
    t = pl.program_id(2)

    @pl.when(t == 0)
    def _():
        out_ref[...] = jnp.zeros_like(out_ref)

    C = score_ref.shape[0]

    tgt = target_ref[0].astype(jnp.int32)                    # (rows_tile, 128)

    if need_mask:
        # Global pixel index of every element in this block; anything at or
        # beyond H*W (ragged last row-tile / lane padding) is neutralized on
        # both the label side (-> -1 -> one-hot 0) and the score side (-> 0).
        s = pl.program_id(1)
        row_start = (s * pl.num_programs(2) + t) * rows_tile
        rows = jax.lax.broadcasted_iota(jnp.int32, (rows_tile, 128), 0)
        lanes = jax.lax.broadcasted_iota(jnp.int32, (rows_tile, 128), 1)
        valid = (row_start + rows) * 128 + lanes < hw
        tgt = jnp.where(valid, tgt, -1)
    else:
        valid = None

    # Upcast after the DMA so bf16 scores stream at half the HBM traffic.
    scores = [score_ref[c].astype(jnp.float32) for c in range(C)]

    if fuse_softmax:
        # Softmax over classes as elementwise max/add across C slabs (pure
        # VPU, no cross-sublane reduce); exp on the EUP; exact divide.
        m = scores[0]
        for c in range(1, C):
            m = jnp.maximum(m, scores[c])
        exps = [jnp.exp(sc - m) for sc in scores]
        denom = exps[0]
        for e in exps[1:]:
            denom = denom + e
        inv = 1.0 / denom
        scores = [e * inv for e in exps]

    if valid is not None:
        scores = [jnp.where(valid, sc, 0.0) for sc in scores]

    for c in range(C):
        onehot = (tgt == c).astype(jnp.float32)              # (rows_tile, 128)
        p = scores[c]
        out_ref[pl.ds(0 * C + c, 1), :] += jnp.sum(p * onehot, axis=0,
                                                   keepdims=True)
        out_ref[pl.ds(1 * C + c, 1), :] += jnp.sum(p * p, axis=0,
                                                   keepdims=True)
        out_ref[pl.ds(2 * C + c, 1), :] += jnp.sum(onehot, axis=0,
                                                   keepdims=True)


def dice_loss(inputs, target, n_classes, weight=None, softmax=False,
              rows_per_tile=512, num_shards=1, core_parallel=False,
              input_buffers=None):
    """JAX/Pallas equivalent of DiceLoss.forward.

    inputs: (N, C, H, W) float logits/probs (NCHW, like PyTorch; f32 or bf16)
    target: (N, H, W)    integer class labels (any int dtype; int8 is cheapest)
    """
    N, C, H, W = inputs.shape
    assert C == n_classes, (inputs.shape, n_classes)
    assert rows_per_tile % 8 == 0 and rows_per_tile > 0, rows_per_tile

    HW = H * W
    R = pl.cdiv(HW, 128)              # number of 128-lane pixel rows
    HW128 = R * 128

    score3 = inputs.reshape(N, C, HW)
    tgt3 = target.reshape(N, 1, HW)
    if HW128 != HW:
        # Only when H*W is not a multiple of 128 (<=127 pixels of lane pad);
        # pad values are irrelevant -- the kernel masks by global pixel index.
        score3 = jnp.pad(score3, ((0, 0), (0, 0), (0, HW128 - HW)))
        tgt3 = jnp.pad(tgt3, ((0, 0), (0, 0), (0, HW128 - HW)),
                       constant_values=-1)
    score4 = score3.reshape(N, C, R, 128)      # free, contiguous reshape
    tgt4 = tgt3.reshape(N, 1, R, 128)

    rows_tile = min(rows_per_tile, R)          # == R (full dim) for small maps
    num_row_tiles = pl.cdiv(R, rows_tile)
    S = max(1, min(num_shards, num_row_tiles))
    T = pl.cdiv(num_row_tiles, S)
    need_mask = (S * T * rows_tile * 128) != HW

    kernel = functools.partial(_dice_sums_kernel,
                               fuse_softmax=bool(softmax),
                               need_mask=bool(need_mask),
                               rows_tile=rows_tile, hw=HW)

    if core_parallel:
        # v7x: actually shard the S axis across the two TensorCores.
        semantics = (pltpu.PARALLEL, pltpu.CORE_PARALLEL, pltpu.ARBITRARY)
    else:
        semantics = ("parallel", "parallel", "arbitrary")

    def in_spec(block_c):
        kwargs = {}
        if input_buffers is not None:
            kwargs["pipeline_mode"] = pl.Buffered(input_buffers)
        return pl.BlockSpec((None, block_c, rows_tile, 128),
                            lambda n, s, t: (n, 0, s * T + t, 0), **kwargs)

    bytes_accessed = (score4.size * score4.dtype.itemsize
                      + tgt4.size * tgt4.dtype.itemsize
                      + N * S * 3 * C * 128 * 4)
    cost = pl.CostEstimate(
        flops=int(10 * N * C * HW),
        transcendentals=int(N * C * HW) if softmax else 0,
        bytes_accessed=int(bytes_accessed))

    sums = pl.pallas_call(
        kernel,
        out_shape=jax.ShapeDtypeStruct((N, S, 3 * C, 128), jnp.float32),
        grid_spec=pltpu.PrefetchScalarGridSpec(
            num_scalar_prefetch=0,
            grid=(N, S, T),
            in_specs=[in_spec(C), in_spec(1)],
            out_specs=pl.BlockSpec((None, None, 3 * C, 128),
                                   lambda n, s, t: (n, s, 0, 0)),
        ),
        compiler_params=pltpu.CompilerParams(dimension_semantics=semantics),
        cost_estimate=cost,
    )(score4, tgt4)

    totals = jnp.sum(sums, axis=(0, 1, 3)).reshape(3, C)     # tiny finish
    intersect, z_sum, y_sum = totals[0], totals[1], totals[2]
    smooth = 1e-05
    per_class = 1.0 - (2.0 * intersect + smooth) / (z_sum + y_sum + smooth)

    if weight is None:
        weight = jnp.ones((n_classes,), jnp.float32)
    else:
        weight = jnp.asarray(weight, jnp.float32)
    return jnp.sum(per_class * weight) / n_classes


def dice_loss_ref(inputs, target, n_classes, weight=None, softmax=False):
    """Pure-JAX reference mirroring the PyTorch module exactly."""
    if softmax:
        inputs = jax.nn.softmax(inputs, axis=1)
    onehot = (target[:, None, :, :] == jnp.arange(n_classes)[None, :, None, None]
              ).astype(jnp.float32)
    if weight is None:
        weight = [1.0] * n_classes
    smooth = 1e-05
    loss = 0.0
    for i in range(n_classes):
        score = inputs[:, i]
        tgt = onehot[:, i]
        intersect = jnp.sum(score * tgt)
        y_sum = jnp.sum(tgt * tgt)
        z_sum = jnp.sum(score * score)
        dice = 1.0 - (2.0 * intersect + smooth) / (z_sum + y_sum + smooth)
        loss = loss + dice * weight[i]
    return loss / n_classes


if __name__ == "__main__":
    n_classes = 4
    key = jax.random.PRNGKey(0)
    k1, k2, k3, k4 = jax.random.split(key, 4)

    # Case 1: 16x16 NCHW logits, fused softmax (H*W multiple of 128 -> no pad,
    # no in-kernel mask).
    N, H, W = 2, 16, 16
    inputs = jax.random.normal(k1, (N, n_classes, H, W), dtype=jnp.float32)
    target = jax.random.randint(k2, (N, H, W), 0, n_classes, dtype=jnp.int32)
    fn = jax.jit(functools.partial(dice_loss, n_classes=n_classes, softmax=True))
    loss = jax.block_until_ready(fn(inputs, target))
    expected = dice_loss_ref(inputs, target, n_classes, softmax=True)
    assert jnp.allclose(loss, expected, rtol=1e-5, atol=1e-6), (loss, expected)

    # Case 2: 10x10 (H*W not a multiple of 128) -> lane pad + in-kernel
    # global-pixel-index mask, fused softmax.
    H2, W2 = 10, 10
    inputs2 = jax.random.normal(k3, (N, n_classes, H2, W2), dtype=jnp.float32)
    target2 = jax.random.randint(k4, (N, H2, W2), 0, n_classes, dtype=jnp.int32)
    loss2 = jax.block_until_ready(
        jax.jit(functools.partial(dice_loss, n_classes=n_classes,
                                  softmax=True))(inputs2, target2))
    expected2 = dice_loss_ref(inputs2, target2, n_classes, softmax=True)
    assert jnp.allclose(loss2, expected2, rtol=1e-5, atol=1e-6), (loss2, expected2)

    # Case 3: pre-softmaxed probabilities, softmax=False, int8 labels (4x less
    # label HBM traffic), class weights, ragged tail.
    probs = jax.nn.softmax(inputs2, axis=1)
    w = [1.0, 2.0, 0.5, 1.5]
    loss3 = jax.block_until_ready(
        jax.jit(functools.partial(dice_loss, n_classes=n_classes, weight=w,
                                  softmax=False))(probs, target2.astype(jnp.int8)))
    expected3 = dice_loss_ref(probs, target2, n_classes, weight=w, softmax=False)
    assert jnp.allclose(loss3, expected3, rtol=1e-5, atol=1e-6), (loss3, expected3)

    # Case 4: bf16 logits stream at half the HBM traffic; the kernel upcasts
    # post-DMA, so it matches the f32 reference evaluated on the same values.
    inputs_bf16 = inputs.astype(jnp.bfloat16)
    loss4 = jax.block_until_ready(fn(inputs_bf16, target))
    expected4 = dice_loss_ref(inputs_bf16.astype(jnp.float32), target,
                              n_classes, softmax=True)
    assert jnp.allclose(loss4, expected4, rtol=1e-5, atol=1e-6), (loss4, expected4)

    print("KERNEL_OK")
</pallas_src>

<mosaic_0001>
module attributes {stable_mosaic.version = 11 : i64} {
  func.func @_dice_sums_kernel(%arg0: i32, %arg1: i32, %arg2: i32, %arg3: memref<1x4x2x128xf32, #tpu.memory_space<vmem>>, %arg4: memref<1x1x2x128xi32, #tpu.memory_space<vmem>>, %arg5: memref<1x1x12x128xf32, #tpu.memory_space<vmem>>) attributes {dimension_semantics = [#tpu.dimension_semantics<parallel>, #tpu.dimension_semantics<parallel>, #tpu.dimension_semantics<arbitrary>], iteration_bounds = array<i64: 2, 1, 1>, scalar_prefetch = 0 : i64, scratch_operands = 0 : i64, tpu.core_type = #tpu.core_type<tc>, window_params = [{transform_indices = @transform_0, window_bounds = array<i64: 1, 4, 2, 128>}, {transform_indices = @transform_1, window_bounds = array<i64: 1, 1, 2, 128>}, {transform_indices = @transform_2, window_bounds = array<i64: 1, 1, 12, 128>}]} {
    %c0_i32 = arith.constant 0 : i32
    %0 = arith.cmpi eq, %arg2, %c0_i32 : i32
    %1 = arith.extui %0 : i1 to i32
    %c0_i32_0 = arith.constant 0 : i32
    %2 = arith.cmpi ne, %1, %c0_i32_0 : i32
    scf.if %2 {
      %cst_118 = arith.constant 0.000000e+00 : f32
      %153 = vector.broadcast %cst_118 : f32 to vector<12x128xf32>
      %c0_119 = arith.constant 0 : index
      %c0_120 = arith.constant 0 : index
      %c0_121 = arith.constant 0 : index
      %c0_122 = arith.constant 0 : index
      %154 = vector.load %arg5[%c0_119, %c0_120, %c0_121, %c0_122] : memref<1x1x12x128xf32, #tpu.memory_space<vmem>>, vector<1x1x12x128xf32>
      %155 = vector.shape_cast %154 : vector<1x1x12x128xf32> to vector<12x128xf32>
      %156 = vector.shape_cast %153 : vector<12x128xf32> to vector<1x1x12x128xf32>
      tpu.vector_store %arg5[%c0_119, %c0_120, %c0_121, %c0_122], %156 {strides = array<i32>} : memref<1x1x12x128xf32, #tpu.memory_space<vmem>>, vector<1x1x12x128xf32>,
    } else {
    }
    %c0 = arith.constant 0 : index
    %c0_1 = arith.constant 0 : index
    %c0_2 = arith.constant 0 : index
    %c0_3 = arith.constant 0 : index
    %3 = vector.load %arg4[%c0, %c0_1, %c0_2, %c0_3] : memref<1x1x2x128xi32, #tpu.memory_space<vmem>>, vector<1x1x2x128xi32>
    %4 = vector.shape_cast %3 : vector<1x1x2x128xi32> to vector<2x128xi32>
    %c0_4 = arith.constant 0 : index
    %c0_5 = arith.constant 0 : index
    %c0_6 = arith.constant 0 : index
    %c0_7 = arith.constant 0 : index
    %5 = vector.load %arg3[%c0_4, %c0_5, %c0_6, %c0_7] : memref<1x4x2x128xf32, #tpu.memory_space<vmem>>, vector<1x1x2x128xf32>
    %6 = vector.shape_cast %5 : vector<1x1x2x128xf32> to vector<2x128xf32>
    %c0_8 = arith.constant 0 : index
    %c1 = arith.constant 1 : index
    %c0_9 = arith.constant 0 : index
    %c0_10 = arith.constant 0 : index
    %7 = vector.load %arg3[%c0_8, %c1, %c0_9, %c0_10] : memref<1x4x2x128xf32, #tpu.memory_space<vmem>>, vector<1x1x2x128xf32>
    %8 = vector.shape_cast %7 : vector<1x1x2x128xf32> to vector<2x128xf32>
    %c0_11 = arith.constant 0 : index
    %c2 = arith.constant 2 : index
    %c0_12 = arith.constant 0 : index
    %c0_13 = arith.constant 0 : index
    %9 = vector.load %arg3[%c0_11, %c2, %c0_12, %c0_13] : memref<1x4x2x128xf32, #tpu.memory_space<vmem>>, vector<1x1x2x128xf32>
    %10 = vector.shape_cast %9 : vector<1x1x2x128xf32> to vector<2x128xf32>
    %c0_14 = arith.constant 0 : index
    %c3 = arith.constant 3 : index
    %c0_15 = arith.constant 0 : index
    %c0_16 = arith.constant 0 : index
    %11 = vector.load %arg3[%c0_14, %c3, %c0_15, %c0_16] : memref<1x4x2x128xf32, #tpu.memory_space<vmem>>, vector<1x1x2x128xf32>
    %12 = vector.shape_cast %11 : vector<1x1x2x128xf32> to vector<2x128xf32>
    %13 = arith.maximumf %6, %8 : vector<2x128xf32>
    %14 = arith.maximumf %13, %10 : vector<2x128xf32>
    %15 = arith.maximumf %14, %12 : vector<2x128xf32>
    %16 = arith.subf %6, %15 : vector<2x128xf32>
    %17 = math.exp %16 : vector<2x128xf32>
    %18 = arith.subf %8, %15 : vector<2x128xf32>
    %19 = math.exp %18 : vector<2x128xf32>
    %20 = arith.subf %10, %15 : vector<2x128xf32>
    %21 = math.exp %20 : vector<2x128xf32>
    %22 = arith.subf %12, %15 : vector<2x128xf32>
    %23 = math.exp %22 : vector<2x128xf32>
    %24 = arith.addf %17, %19 : vector<2x128xf32>
    %25 = arith.addf %24, %21 : vector<2x128xf32>
    %26 = arith.addf %25, %23 : vector<2x128xf32>
    %cst = arith.constant 1.000000e+00 : f32
    %27 = vector.broadcast %cst : f32 to vector<2x128xf32>
    %28 = arith.divf %27, %26 : vector<2x128xf32>
    %29 = arith.mulf %17, %28 : vector<2x128xf32>
    %30 = arith.mulf %19, %28 : vector<2x128xf32>
    %31 = arith.mulf %21, %28 : vector<2x128xf32>
    %32 = arith.mulf %23, %28 : vector<2x128xf32>
    %c0_i32_17 = arith.constant 0 : i32
    %33 = vector.broadcast %c0_i32_17 : i32 to vector<2x128xi32>
    %34 = arith.cmpi eq, %4, %33 : vector<2x128xi32>
    %35 = arith.extui %34 : vector<2x128xi1> to vector<2x128xi32>
    %36 = arith.sitofp %35 : vector<2x128xi32> to vector<2x128xf32>
    %c0_18 = arith.constant 0 : index
    %c0_19 = arith.constant 0 : index
    %c0_20 = arith.constant 0 : index
    %c0_21 = arith.constant 0 : index
    %37 = vector.load %arg5[%c0_18, %c0_19, %c0_20, %c0_21] : memref<1x1x12x128xf32, #tpu.memory_space<vmem>>, vector<1x1x1x128xf32>
    %38 = vector.shape_cast %37 : vector<1x1x1x128xf32> to vector<1x128xf32>
    %39 = arith.mulf %29, %36 : vector<2x128xf32>
    %cst_22 = arith.constant dense<0.000000e+00> : vector<128xf32>
    %40 = vector.multi_reduction <add>, %39, %cst_22 [0] : vector<2x128xf32> to vector<128xf32>
    %41 = vector.shape_cast %40 : vector<128xf32> to vector<1x128xf32>
    %42 = arith.addf %38, %41 : vector<1x128xf32>
    %c0_23 = arith.constant 0 : index
    %c0_24 = arith.constant 0 : index
    %c0_25 = arith.constant 0 : index
    %c0_26 = arith.constant 0 : index
    %43 = vector.load %arg5[%c0_23, %c0_24, %c0_25, %c0_26] : memref<1x1x12x128xf32, #tpu.memory_space<vmem>>, vector<1x1x1x128xf32>
    %44 = vector.shape_cast %43 : vector<1x1x1x128xf32> to vector<1x128xf32>
    %45 = vector.shape_cast %42 : vector<1x128xf32> to vector<1x1x1x128xf32>
    tpu.vector_store %arg5[%c0_23, %c0_24, %c0_25, %c0_26], %45 {strides = array<i32>} : memref<1x1x12x128xf32, #tpu.memory_space<vmem>>, vector<1x1x1x128xf32>,
    %c0_27 = arith.constant 0 : index
    %c0_28 = arith.constant 0 : index
    %c4 = arith.constant 4 : index
    %c0_29 = arith.constant 0 : index
    %46 = vector.load %arg5[%c0_27, %c0_28, %c4, %c0_29] : memref<1x1x12x128xf32, #tpu.memory_space<vmem>>, vector<1x1x1x128xf32>
    %47 = vector.shape_cast %46 : vector<1x1x1x128xf32> to vector<1x128xf32>
    %48 = arith.mulf %29, %29 : vector<2x128xf32>
    %cst_30 = arith.constant dense<0.000000e+00> : vector<128xf32>
    %49 = vector.multi_reduction <add>, %48, %cst_30 [0] : vector<2x128xf32> to vector<128xf32>
    %50 = vector.shape_cast %49 : vector<128xf32> to vector<1x128xf32>
    %51 = arith.addf %47, %50 : vector<1x128xf32>
    %c0_31 = arith.constant 0 : index
    %c0_32 = arith.constant 0 : index
    %c4_33 = arith.constant 4 : index
    %c0_34 = arith.constant 0 : index
    %52 = vector.load %arg5[%c0_31, %c0_32, %c4_33, %c0_34] : memref<1x1x12x128xf32, #tpu.memory_space<vmem>>, vector<1x1x1x128xf32>
    %53 = vector.shape_cast %52 : vector<1x1x1x128xf32> to vector<1x128xf32>
    %54 = vector.shape_cast %51 : vector<1x128xf32> to vector<1x1x1x128xf32>
    tpu.vector_store %arg5[%c0_31, %c0_32, %c4_33, %c0_34], %54 {strides = array<i32>} : memref<1x1x12x128xf32, #tpu.memory_space<vmem>>, vector<1x1x1x128xf32>,
    %c0_35 = arith.constant 0 : index
    %c0_36 = arith.constant 0 : index
    %c8 = arith.constant 8 : index
    %c0_37 = arith.constant 0 : index
    %55 = vector.load %arg5[%c0_35, %c0_36, %c8, %c0_37] : memref<1x1x12x128xf32, #tpu.memory_space<vmem>>, vector<1x1x1x128xf32>
    %56 = vector.shape_cast %55 : vector<1x1x1x128xf32> to vector<1x128xf32>
    %cst_38 = arith.constant dense<0.000000e+00> : vector<128xf32>
    %57 = vector.multi_reduction <add>, %36, %cst_38 [0] : vector<2x128xf32> to vector<128xf32>
    %58 = vector.shape_cast %57 : vector<128xf32> to vector<1x128xf32>
    %59 = arith.addf %56, %58 : vector<1x128xf32>
    %c0_39 = arith.constant 0 : index
    %c0_40 = arith.constant 0 : index
    %c8_41 = arith.constant 8 : index
    %c0_42 = arith.constant 0 : index
    %60 = vector.load %arg5[%c0_39, %c0_40, %c8_41, %c0_42] : memref<1x1x12x128xf32, #tpu.memory_space<vmem>>, vector<1x1x1x128xf32>
    %61 = vector.shape_cast %60 : vector<1x1x1x128xf32> to vector<1x128xf32>
    %62 = vector.shape_cast %59 : vector<1x128xf32> to vector<1x1x1x128xf32>
    tpu.vector_store %arg5[%c0_39, %c0_40, %c8_41, %c0_42], %62 {strides = array<i32>} : memref<1x1x12x128xf32, #tpu.memory_space<vmem>>, vector<1x1x1x128xf32>,
    %c1_i32 = arith.constant 1 : i32
    %63 = vector.broadcast %c1_i32 : i32 to vector<2x128xi32>
    %64 = arith.cmpi eq, %4, %63 : vector<2x128xi32>
    %65 = arith.extui %64 : vector<2x128xi1> to vector<2x128xi32>
    %66 = arith.sitofp %65 : vector<2x128xi32> to vector<2x128xf32>
    %c0_43 = arith.constant 0 : index
    %c0_44 = arith.constant 0 : index
    %c1_45 = arith.constant 1 : index
    %c0_46 = arith.constant 0 : index
    %67 = vector.load %arg5[%c0_43, %c0_44, %c1_45, %c0_46] : memref<1x1x12x128xf32, #tpu.memory_space<vmem>>, vector<1x1x1x128xf32>
    %68 = vector.shape_cast %67 : vector<1x1x1x128xf32> to vector<1x128xf32>
    %69 = arith.mulf %30, %66 : vector<2x128xf32>
    %cst_47 = arith.constant dense<0.000000e+00> : vector<128xf32>
    %70 = vector.multi_reduction <add>, %69, %cst_47 [0] : vector<2x128xf32> to vector<128xf32>
    %71 = vector.shape_cast %70 : vector<128xf32> to vector<1x128xf32>
    %72 = arith.addf %68, %71 : vector<1x128xf32>
    %c0_48 = arith.constant 0 : index
    %c0_49 = arith.constant 0 : index
    %c1_50 = arith.constant 1 : index
    %c0_51 = arith.constant 0 : index
    %73 = vector.load %arg5[%c0_48, %c0_49, %c1_50, %c0_51] : memref<1x1x12x128xf32, #tpu.memory_space<vmem>>, vector<1x1x1x128xf32>
    %74 = vector.shape_cast %73 : vector<1x1x1x128xf32> to vector<1x128xf32>
    %75 = vector.shape_cast %72 : vector<1x128xf32> to vector<1x1x1x128xf32>
    tpu.vector_store %arg5[%c0_48, %c0_49, %c1_50, %c0_51], %75 {strides = array<i32>} : memref<1x1x12x128xf32, #tpu.memory_space<vmem>>, vector<1x1x1x128xf32>,
    %c0_52 = arith.constant 0 : index
    %c0_53 = arith.constant 0 : index
    %c5 = arith.constant 5 : index
    %c0_54 = arith.constant 0 : index
    %76 = vector.load %arg5[%c0_52, %c0_53, %c5, %c0_54] : memref<1x1x12x128xf32, #tpu.memory_space<vmem>>, vector<1x1x1x128xf32>
    %77 = vector.shape_cast %76 : vector<1x1x1x128xf32> to vector<1x128xf32>
    %78 = arith.mulf %30, %30 : vector<2x128xf32>
    %cst_55 = arith.constant dense<0.000000e+00> : vector<128xf32>
    %79 = vector.multi_reduction <add>, %78, %cst_55 [0] : vector<2x128xf32> to vector<128xf32>
    %80 = vector.shape_cast %79 : vector<128xf32> to vector<1x128xf32>
    %81 = arith.addf %77, %80 : vector<1x128xf32>
    %c0_56 = arith.constant 0 : index
    %c0_57 = arith.constant 0 : index
    %c5_58 = arith.constant 5 : index
    %c0_59 = arith.constant 0 : index
    %82 = vector.load %arg5[%c0_56, %c0_57, %c5_58, %c0_59] : memref<1x1x12x128xf32, #tpu.memory_space<vmem>>, vector<1x1x1x128xf32>
    %83 = vector.shape_cast %82 : vector<1x1x1x128xf32> to vector<1x128xf32>
    %84 = vector.shape_cast %81 : vector<1x128xf32> to vector<1x1x1x128xf32>
    tpu.vector_store %arg5[%c0_56, %c0_57, %c5_58, %c0_59], %84 {strides = array<i32>} : memref<1x1x12x128xf32, #tpu.memory_space<vmem>>, vector<1x1x1x128xf32>,
    %c0_60 = arith.constant 0 : index
    %c0_61 = arith.constant 0 : index
    %c9 = arith.constant 9 : index
    %c0_62 = arith.constant 0 : index
    %85 = vector.load %arg5[%c0_60, %c0_61, %c9, %c0_62] : memref<1x1x12x128xf32, #tpu.memory_space<vmem>>, vector<1x1x1x128xf32>
    %86 = vector.shape_cast %85 : vector<1x1x1x128xf32> to vector<1x128xf32>
    %cst_63 = arith.constant dense<0.000000e+00> : vector<128xf32>
    %87 = vector.multi_reduction <add>, %66, %cst_63 [0] : vector<2x128xf32> to vector<128xf32>
    %88 = vector.shape_cast %87 : vector<128xf32> to vector<1x128xf32>
    %89 = arith.addf %86, %88 : vector<1x128xf32>
    %c0_64 = arith.constant 0 : index
    %c0_65 = arith.constant 0 : index
    %c9_66 = arith.constant 9 : index
    %c0_67 = arith.constant 0 : index
    %90 = vector.load %arg5[%c0_64, %c0_65, %c9_66, %c0_67] : memref<1x1x12x128xf32, #tpu.memory_space<vmem>>, vector<1x1x1x128xf32>
    %91 = vector.shape_cast %90 : vector<1x1x1x128xf32> to vector<1x128xf32>
    %92 = vector.shape_cast %89 : vector<1x128xf32> to vector<1x1x1x128xf32>
    tpu.vector_store %arg5[%c0_64, %c0_65, %c9_66, %c0_67], %92 {strides = array<i32>} : memref<1x1x12x128xf32, #tpu.memory_space<vmem>>, vector<1x1x1x128xf32>,
    %c2_i32 = arith.constant 2 : i32
    %93 = vector.broadcast %c2_i32 : i32 to vector<2x128xi32>
    %94 = arith.cmpi eq, %4, %93 : vector<2x128xi32>
    %95 = arith.extui %94 : vector<2x128xi1> to vector<2x128xi32>
    %96 = arith.sitofp %95 : vector<2x128xi32> to vector<2x128xf32>
    %c0_68 = arith.constant 0 : index
    %c0_69 = arith.constant 0 : index
    %c2_70 = arith.constant 2 : index
    %c0_71 = arith.constant 0 : index
    %97 = vector.load %arg5[%c0_68, %c0_69, %c2_70, %c0_71] : memref<1x1x12x128xf32, #tpu.memory_space<vmem>>, vector<1x1x1x128xf32>
    %98 = vector.shape_cast %97 : vector<1x1x1x128xf32> to vector<1x128xf32>
    %99 = arith.mulf %31, %96 : vector<2x128xf32>
    %cst_72 = arith.constant dense<0.000000e+00> : vector<128xf32>
    %100 = vector.multi_reduction <add>, %99, %cst_72 [0] : vector<2x128xf32> to vector<128xf32>
    %101 = vector.shape_cast %100 : vector<128xf32> to vector<1x128xf32>
    %102 = arith.addf %98, %101 : vector<1x128xf32>
    %c0_73 = arith.constant 0 : index
    %c0_74 = arith.constant 0 : index
    %c2_75 = arith.constant 2 : index
    %c0_76 = arith.constant 0 : index
    %103 = vector.load %arg5[%c0_73, %c0_74, %c2_75, %c0_76] : memref<1x1x12x128xf32, #tpu.memory_space<vmem>>, vector<1x1x1x128xf32>
    %104 = vector.shape_cast %103 : vector<1x1x1x128xf32> to vector<1x128xf32>
    %105 = vector.shape_cast %102 : vector<1x128xf32> to vector<1x1x1x128xf32>
    tpu.vector_store %arg5[%c0_73, %c0_74, %c2_75, %c0_76], %105 {strides = array<i32>} : memref<1x1x12x128xf32, #tpu.memory_space<vmem>>, vector<1x1x1x128xf32>,
    %c0_77 = arith.constant 0 : index
    %c0_78 = arith.constant 0 : index
    %c6 = arith.constant 6 : index
    %c0_79 = arith.constant 0 : index
    %106 = vector.load %arg5[%c0_77, %c0_78, %c6, %c0_79] : memref<1x1x12x128xf32, #tpu.memory_space<vmem>>, vector<1x1x1x128xf32>
    %107 = vector.shape_cast %106 : vector<1x1x1x128xf32> to vector<1x128xf32>
    %108 = arith.mulf %31, %31 : vector<2x128xf32>
    %cst_80 = arith.constant dense<0.000000e+00> : vector<128xf32>
    %109 = vector.multi_reduction <add>, %108, %cst_80 [0] : vector<2x128xf32> to vector<128xf32>
    %110 = vector.shape_cast %109 : vector<128xf32> to vector<1x128xf32>
    %111 = arith.addf %107, %110 : vector<1x128xf32>
    %c0_81 = arith.constant 0 : index
    %c0_82 = arith.constant 0 : index
    %c6_83 = arith.constant 6 : index
    %c0_84 = arith.constant 0 : index
    %112 = vector.load %arg5[%c0_81, %c0_82, %c6_83, %c0_84] : memref<1x1x12x128xf32, #tpu.memory_space<vmem>>, vector<1x1x1x128xf32>
    %113 = vector.shape_cast %112 : vector<1x1x1x128xf32> to vector<1x128xf32>
    %114 = vector.shape_cast %111 : vector<1x128xf32> to vector<1x1x1x128xf32>
    tpu.vector_store %arg5[%c0_81, %c0_82, %c6_83, %c0_84], %114 {strides = array<i32>} : memref<1x1x12x128xf32, #tpu.memory_space<vmem>>, vector<1x1x1x128xf32>,
    %c0_85 = arith.constant 0 : index
    %c0_86 = arith.constant 0 : index
    %c10 = arith.constant 10 : index
    %c0_87 = arith.constant 0 : index
    %115 = vector.load %arg5[%c0_85, %c0_86, %c10, %c0_87] : memref<1x1x12x128xf32, #tpu.memory_space<vmem>>, vector<1x1x1x128xf32>
    %116 = vector.shape_cast %115 : vector<1x1x1x128xf32> to vector<1x128xf32>
    %cst_88 = arith.constant dense<0.000000e+00> : vector<128xf32>
    %117 = vector.multi_reduction <add>, %96, %cst_88 [0] : vector<2x128xf32> to vector<128xf32>
    %118 = vector.shape_cast %117 : vector<128xf32> to vector<1x128xf32>
    %119 = arith.addf %116, %118 : vector<1x128xf32>
    %c0_89 = arith.constant 0 : index
    %c0_90 = arith.constant 0 : index
    %c10_91 = arith.constant 10 : index
    %c0_92 = arith.constant 0 : index
    %120 = vector.load %arg5[%c0_89, %c0_90, %c10_91, %c0_92] : memref<1x1x12x128xf32, #tpu.memory_space<vmem>>, vector<1x1x1x128xf32>
    %121 = vector.shape_cast %120 : vector<1x1x1x128xf32> to vector<1x128xf32>
    %122 = vector.shape_cast %119 : vector<1x128xf32> to vector<1x1x1x128xf32>
    tpu.vector_store %arg5[%c0_89, %c0_90, %c10_91, %c0_92], %122 {strides = array<i32>} : memref<1x1x12x128xf32, #tpu.memory_space<vmem>>, vector<1x1x1x128xf32>,
    %c3_i32 = arith.constant 3 : i32
    %123 = vector.broadcast %c3_i32 : i32 to vector<2x128xi32>
    %124 = arith.cmpi eq, %4, %123 : vector<2x128xi32>
    %125 = arith.extui %124 : vector<2x128xi1> to vector<2x128xi32>
    %126 = arith.sitofp %125 : vector<2x128xi32> to vector<2x128xf32>
    %c0_93 = arith.constant 0 : index
    %c0_94 = arith.constant 0 : index
    %c3_95 = arith.constant 3 : index
    %c0_96 = arith.constant 0 : index
    %127 = vector.load %arg5[%c0_93, %c0_94, %c3_95, %c0_96] : memref<1x1x12x128xf32, #tpu.memory_space<vmem>>, vector<1x1x1x128xf32>
    %128 = vector.shape_cast %127 : vector<1x1x1x128xf32> to vector<1x128xf32>
    %129 = arith.mulf %32, %126 : vector<2x128xf32>
    %cst_97 = arith.constant dense<0.000000e+00> : vector<128xf32>
    %130 = vector.multi_reduction <add>, %129, %cst_97 [0] : vector<2x128xf32> to vector<128xf32>
    %131 = vector.shape_cast %130 : vector<128xf32> to vector<1x128xf32>
    %132 = arith.addf %128, %131 : vector<1x128xf32>
    %c0_98 = arith.constant 0 : index
    %c0_99 = arith.constant 0 : index
    %c3_100 = arith.constant 3 : index
    %c0_101 = arith.constant 0 : index
    %133 = vector.load %arg5[%c0_98, %c0_99, %c3_100, %c0_101] : memref<1x1x12x128xf32, #tpu.memory_space<vmem>>, vector<1x1x1x128xf32>
    %134 = vector.shape_cast %133 : vector<1x1x1x128xf32> to vector<1x128xf32>
    %135 = vector.shape_cast %132 : vector<1x128xf32> to vector<1x1x1x128xf32>
    tpu.vector_store %arg5[%c0_98, %c0_99, %c3_100, %c0_101], %135 {strides = array<i32>} : memref<1x1x12x128xf32, #tpu.memory_space<vmem>>, vector<1x1x1x128xf32>,
    %c0_102 = arith.constant 0 : index
    %c0_103 = arith.constant 0 : index
    %c7 = arith.constant 7 : index
    %c0_104 = arith.constant 0 : index
    %136 = vector.load %arg5[%c0_102, %c0_103, %c7, %c0_104] : memref<1x1x12x128xf32, #tpu.memory_space<vmem>>, vector<1x1x1x128xf32>
    %137 = vector.shape_cast %136 : vector<1x1x1x128xf32> to vector<1x128xf32>
    %138 = arith.mulf %32, %32 : vector<2x128xf32>
    %cst_105 = arith.constant dense<0.000000e+00> : vector<128xf32>
    %139 = vector.multi_reduction <add>, %138, %cst_105 [0] : vector<2x128xf32> to vector<128xf32>
    %140 = vector.shape_cast %139 : vector<128xf32> to vector<1x128xf32>
    %141 = arith.addf %137, %140 : vector<1x128xf32>
    %c0_106 = arith.constant 0 : index
    %c0_107 = arith.constant 0 : index
    %c7_108 = arith.constant 7 : index
    %c0_109 = arith.constant 0 : index
    %142 = vector.load %arg5[%c0_106, %c0_107, %c7_108, %c0_109] : memref<1x1x12x128xf32, #tpu.memory_space<vmem>>, vector<1x1x1x128xf32>
    %143 = vector.shape_cast %142 : vector<1x1x1x128xf32> to vector<1x128xf32>
    %144 = vector.shape_cast %141 : vector<1x128xf32> to vector<1x1x1x128xf32>
    tpu.vector_store %arg5[%c0_106, %c0_107, %c7_108, %c0_109], %144 {strides = array<i32>} : memref<1x1x12x128xf32, #tpu.memory_space<vmem>>, vector<1x1x1x128xf32>,
    %c0_110 = arith.constant 0 : index
    %c0_111 = arith.constant 0 : index
    %c11 = arith.constant 11 : index
    %c0_112 = arith.constant 0 : index
    %145 = vector.load %arg5[%c0_110, %c0_111, %c11, %c0_112] : memref<1x1x12x128xf32, #tpu.memory_space<vmem>>, vector<1x1x1x128xf32>
    %146 = vector.shape_cast %145 : vector<1x1x1x128xf32> to vector<1x128xf32>
    %cst_113 = arith.constant dense<0.000000e+00> : vector<128xf32>
    %147 = vector.multi_reduction <add>, %126, %cst_113 [0] : vector<2x128xf32> to vector<128xf32>
    %148 = vector.shape_cast %147 : vector<128xf32> to vector<1x128xf32>
    %149 = arith.addf %146, %148 : vector<1x128xf32>
    %c0_114 = arith.constant 0 : index
    %c0_115 = arith.constant 0 : index
    %c11_116 = arith.constant 11 : index
    %c0_117 = arith.constant 0 : index
    %150 = vector.load %arg5[%c0_114, %c0_115, %c11_116, %c0_117] : memref<1x1x12x128xf32, #tpu.memory_space<vmem>>, vector<1x1x1x128xf32>
    %151 = vector.shape_cast %150 : vector<1x1x1x128xf32> to vector<1x128xf32>
    %152 = vector.shape_cast %149 : vector<1x128xf32> to vector<1x1x1x128xf32>
    tpu.vector_store %arg5[%c0_114, %c0_115, %c11_116, %c0_117], %152 {strides = array<i32>} : memref<1x1x12x128xf32, #tpu.memory_space<vmem>>, vector<1x1x1x128xf32>,
    return
  }
  func.func @transform_0(%arg0: i32, %arg1: i32, %arg2: i32) -> (i32, i32, i32, i32) {
    %c1_i32 = arith.constant 1 : i32
    %0 = arith.muli %arg1, %c1_i32 : i32
    %1 = arith.addi %0, %arg2 : i32
    %c0_i32 = arith.constant 0 : i32
    %c0_i32_0 = arith.constant 0 : i32
    %c0_i32_1 = arith.constant 0 : i32
    return %arg0, %c0_i32, %1, %c0_i32_0 : i32, i32, i32, i32
  }
  func.func @transform_1(%arg0: i32, %arg1: i32, %arg2: i32) -> (i32, i32, i32, i32) {
    %c1_i32 = arith.constant 1 : i32
    %0 = arith.muli %arg1, %c1_i32 : i32
    %1 = arith.addi %0, %arg2 : i32
    %c0_i32 = arith.constant 0 : i32
    %c0_i32_0 = arith.constant 0 : i32
    %c0_i32_1 = arith.constant 0 : i32
    return %arg0, %c0_i32, %1, %c0_i32_0 : i32, i32, i32, i32
  }
  func.func @transform_2(%arg0: i32, %arg1: i32, %arg2: i32) -> (i32, i32, i32, i32) {
    %c0_i32 = arith.constant 0 : i32
    %c0_i32_0 = arith.constant 0 : i32
    %c0_i32_1 = arith.constant 0 : i32
    return %arg0, %arg1, %c0_i32, %c0_i32_0 : i32, i32, i32, i32
  }
}

</mosaic_0001>

<bundles_post_ra>
// kernel: dice_loss.1
= control target key start
LH: loop header
LB: loop body
LE: loop exit
PB: predicated region body
PF: predicated region fallthrough
CT: control target
= control target key end

     0   :  { %s608_s9 = smov 0   ;;  %s610_s10 = smov 0   ;;  %s696_s0 = inlined_call_operand.vmem [shape: f32[2,4,2,128], index: 0, kind: input, shape index: {}]   ;;  %s697_s1 = inlined_call_operand.vmem [shape: s32[2,1,2,128], index: 1, kind: input, shape index: {}]   ;;  %s698_s2 = inlined_call_operand.vmem [shape: f32[2,1,12,128], index: 2, kind: output, shape index: {}]  }
   0x1   :  { %s612_s11 = smov 0  }
   0x2 LB: > { %s31_s12 = sadd.s32 1, %s586_s10  ;;  %p516_p0 = scmp.ge.s32.totalorder %s590_s11, 1  ;;  %s590_s11 = sphi %s612_s11, %s12_s11   ;;  %s586_s10 = sphi %s610_s10, %s700_s10   ;;  %s582_s9 = sphi %s608_s9, %s699_s9  }
   0x3   : > { %p33_p1 = scmp.ge.s32.totalorder %s31_s12, 2  ;;  %p160_p2 = scmp.lt.s32.totalorder %s590_s11, 3 }
   0x5   : > { %s702_s12 = smov (%p33_p1, %s31_s12), 0  ;;  %p161_p3 = pnand %p516_p0, %p160_p2 }
   0x6   : > { %p199_p4 = scmp.lt.s32.totalorder (!%p161_p3), %s582_s9, 1 }
   0x7   : > { %164 = sbr.rel (%p161_p3) target bundleno = 86 (0x56), region = 28 }
   0xc   : > { %s704_s9 = smov (!%p199_p4, %s582_s9), 1  ;;  %v592_v0 = vmov 0.0   ;;  %vm269_vm0 = vcmask 1041408  }
   0xd   : > { %s532_s13 = sshll.u32 %s704_s9, 4  ;;  %s531_s14 = sshll.u32 %s704_s9, 3 }
   0xe   : > { %s629_s17 = scalar_lea.vmem %s698_s2, %s532_s13  ;;  %s206_s20 = scalar_lea.vmem %s696_s0, %s531_s14 }
   0xf   : > { %230 = vst [vmem:[%s629_s17] sm:$0xff] %v592_v0  ;;  %231 = vst [vmem:[%s629_s17 + $0x8] sm:$0xf] %v592_v0  ;;  %s519_s21 = sshll.u32 %s704_s9, 1  ;;  %v233_v1 = vld [vmem:[%s206_s20] sm:$0x3] }
  0x10   : > { %v522_v2 = vld [vmem:[%s206_s20 + $0x2] sm:$0x3]  ;;  %s215_s24 = scalar_lea.vmem %s697_s1, %s519_s21  ;;  %v523_v3 = vld [vmem:[%s206_s20 + $0x4] sm:$0x3]  ;;  %v524_v6 = vld [vmem:[%s206_s20 + $0x6] sm:$0x3] }
  0x11   : > { %v240_v4 = vmax.f32 %v233_v1, %v522_v2  ;;  %v232_v5 = vld [vmem:[%s215_s24] sm:$0x3] }
  0x12   : > { %vm264_vm1 = vcmp.eq.s32.totalorder %v232_v5, 0  ;;  %vm300_vm2 = vcmp.eq.s32.totalorder %v232_v5, 1  ;;  %vm335_vm3 = vcmp.eq.s32.totalorder %v232_v5, 2  ;;  %vm370_vm4 = vcmp.eq.s32.totalorder %v232_v5, 3 }
  0x13   : > { %v241_v7 = vmax.f32 %v240_v4, %v523_v3  ;;  %v639_v8 = vsel %vm264_vm1, 1.0, %v592_v0  ;;  %v641_v9 = vsel %vm300_vm2, 1.0, %v592_v0  ;;  %v643_v10 = vsel %vm335_vm3, 1.0, %v592_v0 }
  0x14   : > { %v291_v12 = vsel %vm269_vm0, %v639_v8, 0.0  ;;  %v326_v13 = vsel %vm269_vm0, %v641_v9, 0.0  ;;  %v361_v14 = vsel %vm269_vm0, %v643_v10, 0.0  ;;  %v528_v31 = vsel %vm370_vm4, 1.0, %v592_v0 }
  0x15   : > { %v242_v11 = vmax.f32 %v241_v7, %v524_v6  ;;  %v292_v15 = vrot.slane %v291_v12, 4  ;;  %v327_v16 = vrot.slane %v326_v13, 4  ;;  %v362_v17 = vrot.slane %v361_v14, 4 }
  0x16   : > { %v396_v33 = vsel %vm269_vm0, %v528_v31, 0.0  ;;  %v290_v40 = vld [vmem:[%s629_s17 + $0x8] sm:$0x1]  ;;  %v325_v41 = vld [vmem:[%s629_s17 + $0x9] sm:$0x1] }
  0x17   : > { %v243_v18 = vsub.f32 %v233_v1, %v242_v11  ;;  %v246_v19 = vsub.f32 %v522_v2, %v242_v11  ;;  %v249_v20 = vsub.f32 %v523_v3, %v242_v11  ;;  %v252_v21 = vsub.f32 %v524_v6, %v242_v11  ;;  %v360_v46 = vld [vmem:[%s629_s17 + $0xa] sm:$0x1]  ;;  %v395_v54 = vld [vmem:[%s629_s17 + $0xb] sm:$0x1] }
  0x18   : > { %v293_v22 = vadd.f32 %v292_v15, %v291_v12  ;;  %v328_v23 = vadd.f32 %v327_v16, %v326_v13  ;;  %v363_v24 = vadd.f32 %v362_v17, %v361_v14  ;;  %v397_v37 = vrot.slane %v396_v33, 4 }
  0x19   : > { %v244_v25 = vmul.f32 1.442695, %v243_v18  ;;  %v247_v26 = vmul.f32 1.442695, %v246_v19  ;;  %v250_v27 = vmul.f32 1.442695, %v249_v20 }
  0x1a   : > { %v253_v28 = vmul.f32 1.442695, %v252_v21  ;;  %v294_v29 = vrot.slane %v293_v22, 2  ;;  %v329_v30 = vrot.slane %v328_v23, 2  ;;  %v364_v32 = vrot.slane %v363_v24, 2 }
  0x1b   : > { %558 = vpow2.f32 %v244_v25  ;;  %v398_v43 = vadd.f32 %v397_v37, %v396_v33 }
  0x1c   : > { %560 = vpow2.f32 %v247_v26  ;;  %v295_v34 = vadd.f32 %v294_v29, %v293_v22  ;;  %v330_v35 = vadd.f32 %v329_v30, %v328_v23  ;;  %v365_v36 = vadd.f32 %v364_v32, %v363_v24 }
  0x1d   : > { %562 = vpow2.f32 %v250_v27  ;;  %v399_v48 = vrot.slane %v398_v43, 2 }
  0x1e   : > { %564 = vpow2.f32 %v253_v28  ;;  %v296_v38 = vrot.slane %v295_v34, 1  ;;  %v331_v39 = vrot.slane %v330_v35, 1  ;;  %v366_v42 = vrot.slane %v365_v36, 1 }
  0x1f   : > { %v400_v52 = vadd.f32 %v399_v48, %v398_v43 }
  0x20   : > { %v297_v44 = vadd.f32 %v296_v38, %v295_v34  ;;  %v332_v45 = vadd.f32 %v331_v39, %v330_v35  ;;  %v367_v47 = vadd.f32 %v366_v42, %v365_v36 }
  0x21   : > { %v401_v53 = vrot.slane %v400_v52, 1 }
  0x22   : > { %v298_v49 = vadd.f32 %v297_v44, %v290_v40  ;;  %v333_v50 = vadd.f32 %v332_v45, %v325_v41  ;;  %v368_v51 = vadd.f32 %v367_v47, %v360_v46 }
  0x23   : > { %v402_v55 = vadd.f32 %v401_v53, %v400_v52 }
  0x24   : > { %299 = vst [vmem:[%s629_s17 + $0x8] sm:$0x1] %v298_v49  ;;  %334 = vst [vmem:[%s629_s17 + $0x9] sm:$0x1] %v333_v50  ;;  %v267_v49 = vld [vmem:[%s629_s17] sm:$0x1] }
  0x25   : > { %369 = vst [vmem:[%s629_s17 + $0xa] sm:$0x1] %v368_v51  ;;  %v403_v58 = vadd.f32 %v402_v55, %v395_v54  ;;  %v279_v54 = vld [vmem:[%s629_s17 + $0x4] sm:$0x1]  ;;  %v303_v55 = vld [vmem:[%s629_s17 + $0x1] sm:$0x1] }
  0x27   : > { %404 = vst [vmem:[%s629_s17 + $0xb] sm:$0x1] %v403_v58 }
  0x28   : > { %v559_v56 = vpop.eup %558 }
  0x29   : > { %v561_v57 = vpop.eup %560 }
  0x2a   : > { %v563_v59 = vpop.eup %562  ;;  %v255_v60 = vadd.f32 %v561_v57, %v559_v56 }
  0x2b   : > { %v565_v61 = vpop.eup %564 }
  0x2c   : > { %v256_v62 = vadd.f32 %v563_v59, %v255_v60 }
  0x2e   : > { %v257_v63 = vadd.f32 %v565_v61, %v256_v62 }
  0x30   : > { %566 = vrcp.f32 %v257_v63 }
  0x3d   : > { %v567_v0 = vpop.eup %566 }
  0x3e   : > { %v260_v1 = vmul.f32 %v567_v0, %v559_v56  ;;  %v261_v2 = vmul.f32 %v567_v0, %v561_v57  ;;  %v262_v3 = vmul.f32 %v567_v0, %v563_v59  ;;  %v263_v4 = vmul.f32 %v567_v0, %v565_v61  ;;  %v314_v56 = vld [vmem:[%s629_s17 + $0x5] sm:$0x1] }
  0x40   : > { %v268_v5 = vmul.f32 %v639_v8, %v260_v1  ;;  %v280_v6 = vmul.f32 %v260_v1, %v260_v1  ;;  %v304_v7 = vmul.f32 %v641_v9, %v261_v2  ;;  %v315_v11 = vmul.f32 %v261_v2, %v261_v2  ;;  %v338_v1 = vld [vmem:[%s629_s17 + $0x2] sm:$0x1] }
  0x41   : > { %v339_v12 = vmul.f32 %v643_v10, %v262_v3  ;;  %v350_v13 = vmul.f32 %v262_v3, %v262_v3  ;;  %v374_v14 = vmul.f32 %v528_v31, %v263_v4  ;;  %v385_v15 = vmul.f32 %v263_v4, %v263_v4 }
  0x42   : > { %v270_v16 = vsel %vm269_vm0, %v268_v5, 0.0  ;;  %v281_v17 = vsel %vm269_vm0, %v280_v6, 0.0  ;;  %v305_v18 = vsel %vm269_vm0, %v304_v7, 0.0  ;;  %v316_v19 = vsel %vm269_vm0, %v315_v11, 0.0 }
  0x43   : > { %v271_v20 = vrot.slane %v270_v16, 4  ;;  %v282_v21 = vrot.slane %v281_v17, 4  ;;  %v306_v8 = vrot.slane %v305_v18, 4  ;;  %v317_v22 = vrot.slane %v316_v19, 4 }
  0x44   : > { %v340_v9 = vsel %vm269_vm0, %v339_v12, 0.0  ;;  %v351_v23 = vsel %vm269_vm0, %v350_v13, 0.0  ;;  %v375_v10 = vsel %vm269_vm0, %v374_v14, 0.0  ;;  %v386_v24 = vsel %vm269_vm0, %v385_v15, 0.0  ;;  %v349_v13 = vld [vmem:[%s629_s17 + $0x6] sm:$0x1] }
  0x45   : > { %v272_v25 = vadd.f32 %v271_v20, %v270_v16  ;;  %v283_v26 = vadd.f32 %v282_v21, %v281_v17  ;;  %v307_v27 = vadd.f32 %v306_v8, %v305_v18  ;;  %v318_v28 = vadd.f32 %v317_v22, %v316_v19  ;;  %v373_v14 = vld [vmem:[%s629_s17 + $0x3] sm:$0x1]  ;;  %v384_v15 = vld [vmem:[%s629_s17 + $0x7] sm:$0x1] }
  0x46   : > { %v341_v29 = vrot.slane %v340_v9, 4  ;;  %v352_v30 = vrot.slane %v351_v23, 4  ;;  %v376_v31 = vrot.slane %v375_v10, 4  ;;  %v387_v32 = vrot.slane %v386_v24, 4 }
  0x47   : > { %v273_v33 = vrot.slane %v272_v25, 2  ;;  %v284_v34 = vrot.slane %v283_v26, 2  ;;  %v308_v35 = vrot.slane %v307_v27, 2  ;;  %v319_v36 = vrot.slane %v318_v28, 2 }
  0x48   : > { %v342_v37 = vadd.f32 %v341_v29, %v340_v9  ;;  %v353_v38 = vadd.f32 %v352_v30, %v351_v23  ;;  %v377_v39 = vadd.f32 %v376_v31, %v375_v10  ;;  %v388_v40 = vadd.f32 %v387_v32, %v386_v24 }
  0x49   : > { %v274_v41 = vadd.f32 %v273_v33, %v272_v25  ;;  %v285_v42 = vadd.f32 %v284_v34, %v283_v26  ;;  %v309_v43 = vadd.f32 %v308_v35, %v307_v27  ;;  %v320_v44 = vadd.f32 %v319_v36, %v318_v28 }
  0x4a   : > { %v343_v45 = vrot.slane %v342_v37, 2  ;;  %v354_v46 = vrot.slane %v353_v38, 2  ;;  %v378_v47 = vrot.slane %v377_v39, 2  ;;  %v389_v48 = vrot.slane %v388_v40, 2 }
  0x4b   : > { %v275_v50 = vrot.slane %v274_v41, 1  ;;  %v286_v51 = vrot.slane %v285_v42, 1  ;;  %v310_v52 = vrot.slane %v309_v43, 1  ;;  %v321_v53 = vrot.slane %v320_v44, 1 }
  0x4c   : > { %v344_v57 = vadd.f32 %v343_v45, %v342_v37  ;;  %v355_v58 = vadd.f32 %v354_v46, %v353_v38  ;;  %v379_v59 = vadd.f32 %v378_v47, %v377_v39  ;;  %v390_v60 = vadd.f32 %v389_v48, %v388_v40 }
  0x4d   : > { %v276_v61 = vadd.f32 %v275_v50, %v274_v41  ;;  %v287_v62 = vadd.f32 %v286_v51, %v285_v42  ;;  %v311_v63 = vadd.f32 %v310_v52, %v309_v43  ;;  %v322_v0 = vadd.f32 %v321_v53, %v320_v44 }
  0x4e   : > { %v345_v2 = vrot.slane %v344_v57, 1  ;;  %v356_v3 = vrot.slane %v355_v58, 1  ;;  %v380_v4 = vrot.slane %v379_v59, 1  ;;  %v391_v5 = vrot.slane %v390_v60, 1 }
  0x4f   : > { %v277_v6 = vadd.f32 %v276_v61, %v267_v49  ;;  %v288_v7 = vadd.f32 %v287_v62, %v279_v54  ;;  %v312_v11 = vadd.f32 %v311_v63, %v303_v55  ;;  %v323_v12 = vadd.f32 %v322_v0, %v314_v56 }
  0x50   : > { %v346_v16 = vadd.f32 %v345_v2, %v344_v57  ;;  %v357_v17 = vadd.f32 %v356_v3, %v355_v58  ;;  %v381_v18 = vadd.f32 %v380_v4, %v379_v59  ;;  %v392_v19 = vadd.f32 %v391_v5, %v390_v60 }
  0x51   : > { %278 = vst [vmem:[%s629_s17] sm:$0x1] %v277_v6  ;;  %289 = vst [vmem:[%s629_s17 + $0x4] sm:$0x1] %v288_v7 }
  0x52   : > { %313 = vst [vmem:[%s629_s17 + $0x1] sm:$0x1] %v312_v11  ;;  %324 = vst [vmem:[%s629_s17 + $0x5] sm:$0x1] %v323_v12  ;;  %v347_v20 = vadd.f32 %v346_v16, %v338_v1  ;;  %v358_v21 = vadd.f32 %v357_v17, %v349_v13  ;;  %v382_v8 = vadd.f32 %v381_v18, %v373_v14 }
  0x53   : > { %v393_v22 = vadd.f32 %v392_v19, %v384_v15 }
  0x54   : > { %348 = vst [vmem:[%s629_s17 + $0x2] sm:$0x1] %v347_v20  ;;  %359 = vst [vmem:[%s629_s17 + $0x6] sm:$0x1] %v358_v21 }
  0x55   : > { %383 = vst [vmem:[%s629_s17 + $0x3] sm:$0x1] %v382_v8  ;;  %394 = vst [vmem:[%s629_s17 + $0x7] sm:$0x1] %v393_v22 }
  0x56 PF: > { %s12_s11 = sadd.s32 1, %s590_s11   ;;  %s699_s9 = smov %s586_s10 }
  0x57   : > { %p9_p5 = scmp.ge.s32.totalorder %s12_s11, 4   ;;  %s700_s10 = smov %s702_s12 }
  0x59   :  { %11 = sbr.rel (!%p9_p5) target bundleno = 2 (0x2), region = 68 }

</bundles_post_ra>
